<compile_context>
chip_gen: v7x
topology: tpu7x:2x2x1
jax: 0.10.0
libtpu: 0.0.40
codegen_flags: <defaults>
</compile_context>

<pallas_src>
import jax
import jax.numpy as jnp
from jax.experimental import pallas as pl
from jax.experimental.pallas import tpu as pltpu

_LANE = 128
_SUBLANE = 8

_TILE_VMEM_BUDGET = 32 * 1024 * 1024     # double-buffered input-tile budget
_VMEM_LIMIT_CAP = 48 * 1024 * 1024       # <= ~48 MiB: safe on v7x (64 MiB/TC)
_MAX_STEP_PRED_BYTES = 8 * 1024 * 1024   # no benefit past ~8 MiB pred / step
_MEGACORE_MIN_BYTES = 4 * 1024 * 1024    # split into >= 2 blocks above this
_PALLAS_MIN_BYTES = 1 * 1024 * 1024      # below this plain JAX/XLA wins


def _round_up(x, m):
    return ((x + m - 1) // m) * m


def _nll_partial_kernel(pred_ref, target_ref, o_ref):
    """One grid step: raw (un-negated) partial sum of gathered log-probs."""
    # pred_ref:   (TN, C) VMEM, pred's native dtype (f32 / bf16) log-probs.
    # target_ref: (TN, 1) i32 VMEM; padded rows hold the sentinel -1.
    # o_ref:      (1, 1)  f32 SMEM partial-sum slot for this block.
    pred = pred_ref[...]                                 # no full-tile upcast
    tgt = target_ref[...]                                # (TN, 1)
    tn, c = pred.shape

    col = jax.lax.broadcasted_iota(jnp.int32, (tn, c), dimension=1)
    # Single vselect per vreg; sentinel (-1) rows match no column -> 0.
    sel = jnp.where(col == tgt, pred, jnp.zeros((), pred.dtype))
    # At most one nonzero per row, so the native-dtype lane reduce is exact;
    # upcast only the (TN, 1) per-row values before the f32 accumulation.
    row_val = jnp.sum(sel, axis=-1, keepdims=True).astype(jnp.float32)
    o_ref[0, 0] = jnp.sum(row_val)


def _choose_row_tile(n, c, itemsize):
    """Row tile whose double-buffered, lane-padded VMEM footprint fits the
    budget, with multi-MiB pred HBM per step and >= 2 balanced blocks for
    large (bandwidth-bound) streams so v7x megacore can split the work."""
    lanes = _round_up(max(c, 1), _LANE)
    pred_row_vmem = lanes * itemsize        # lane-padded pred bytes / row
    tgt_row_vmem = _LANE * 4                # (tn, 1) i32 lane-pads to 128
    per_row = 2 * (pred_row_vmem + tgt_row_vmem)   # x2: double-buffered
    tn = _TILE_VMEM_BUDGET // per_row
    tn = min(tn, max(1, _MAX_STEP_PRED_BYTES // max(c * itemsize, 1)))
    tn = max(_SUBLANE, (tn // _SUBLANE) * _SUBLANE)
    if n * c * itemsize >= _MEGACORE_MIN_BYTES:
        # >= 2 balanced blocks so both v7x TensorCores stream half of pred.
        tn = min(tn, _round_up(pl.cdiv(n, 2), _SUBLANE))
        tn = max(_SUBLANE, tn)
    if n <= tn:
        return n                            # single full block
    return tn


def nll_loss_pallas(pred, target, *, row_tile=None):
    """F.nll_loss(pred, target), reduction='mean', via a Pallas TPU kernel.

    pred:   (N, C) log-probabilities (float32 or bfloat16)
    target: (N,)   integer class indices in [0, C)
    """
    n, c = pred.shape
    itemsize = pred.dtype.itemsize

    tn = row_tile if row_tile is not None else _choose_row_tile(n, c, itemsize)
    if tn >= n:
        tn = n                              # single block == full array dims
    assert tn == n or tn % _SUBLANE == 0, "row_tile must be a multiple of 8"

    num_blocks = pl.cdiv(n, tn)
    n_pad = num_blocks * tn

    # Lane/partial-block safety: pad target with an out-of-range sentinel so
    # padded / out-of-bounds pred rows are never selected in the kernel.
    tgt2d = target.astype(jnp.int32).reshape(n, 1)
    if n_pad != n:
        sentinel = jnp.full((n_pad - n, 1), -1, dtype=jnp.int32)
        tgt2d = jnp.concatenate([tgt2d, sentinel], axis=0)

    # Scoped-VMEM limit from the real (lane-padded, double-buffered) footprint.
    lanes = _round_up(max(c, 1), _LANE)
    footprint = 2 * tn * (lanes * itemsize + _LANE * 4)
    vmem_limit = int(min(_VMEM_LIMIT_CAP,
                         max(16 * 1024 * 1024, (footprint * 3) // 2)))

    cost = pl.CostEstimate(
        flops=2 * n * c,
        transcendentals=0,
        bytes_accessed=n * c * itemsize + 4 * n_pad + 4 * num_blocks,
    )

    partials = pl.pallas_call(
        _nll_partial_kernel,
        grid=(num_blocks,),
        out_shape=jax.ShapeDtypeStruct((num_blocks, 1), jnp.float32),
        in_specs=[
            pl.BlockSpec((tn, c), lambda i: (i, 0)),   # pred row tile
            pl.BlockSpec((tn, 1), lambda i: (i, 0)),   # sentinel-padded target
        ],
        out_specs=pl.BlockSpec((1, 1), lambda i: (i, 0),
                               memory_space=pltpu.SMEM),
        compiler_params=pltpu.CompilerParams(
            dimension_semantics=("parallel",),
            vmem_limit_bytes=vmem_limit,
        ),
        cost_estimate=cost,
    )(pred, tgt2d)

    # Finalize once: sum of raw partials, negate, mean.
    return -jnp.sum(partials) / jnp.float32(n)


def _nll_loss_small(pred, target):
    """Plain-JAX path for tiny inputs where pallas launch cost dominates."""
    picked = jnp.take_along_axis(pred.astype(jnp.float32),
                                 target.astype(jnp.int32)[:, None], axis=1)
    return -jnp.mean(picked)


def get_loss_forward(pred, target, *, use_pallas=None, row_tile=None):
    """Forward pass of the `get_loss` module: F.nll_loss(pred, target)."""
    n, c = pred.shape
    if use_pallas is None:
        use_pallas = n * c * pred.dtype.itemsize >= _PALLAS_MIN_BYTES
    if not use_pallas:
        return _nll_loss_small(pred, target)
    return nll_loss_pallas(pred, target, row_tile=row_tile)


if __name__ == "__main__":
    key = jax.random.PRNGKey(0)
    k1, k2, k3, k4, k5, k6 = jax.random.split(key, 6)

    # 1) module-typical small shape (batch=8, classes=32), forced through the
    #    Pallas kernel (single full block).
    N, C = 8, 32
    pred = jax.nn.log_softmax(jax.random.normal(k1, (N, C), jnp.float32), -1)
    target = jax.random.randint(k2, (N,), 0, C, dtype=jnp.int32)
    loss = get_loss_forward(pred, target, use_pallas=True)
    jax.block_until_ready(loss)
    ref = -jnp.mean(pred[jnp.arange(N), target])
    assert jnp.allclose(loss, ref, atol=1e-5, rtol=1e-5), (loss, ref)

    # 2) multi-block grid with a partial, sentinel-padded last tile.
    N2, C2 = 4100, 32
    pred2 = jax.nn.log_softmax(jax.random.normal(k3, (N2, C2), jnp.float32), -1)
    target2 = jax.random.randint(k4, (N2,), 0, C2, dtype=jnp.int32)
    loss2 = get_loss_forward(pred2, target2, use_pallas=True, row_tile=2048)
    jax.block_until_ready(loss2)
    ref2 = -jnp.mean(pred2[jnp.arange(N2), target2])
    assert jnp.allclose(loss2, ref2, atol=1e-4, rtol=1e-4), (loss2, ref2)

    # 3) bf16 stream: select + row reduce in native dtype inside the kernel.
    N3, C3 = 1024, 32
    pred3 = jax.nn.log_softmax(
        jax.random.normal(k5, (N3, C3), jnp.float32), -1).astype(jnp.bfloat16)
    target3 = jax.random.randint(k6, (N3,), 0, C3, dtype=jnp.int32)
    loss3 = get_loss_forward(pred3, target3, use_pallas=True, row_tile=512)
    jax.block_until_ready(loss3)
    ref3 = -jnp.mean(pred3[jnp.arange(N3), target3].astype(jnp.float32))
    assert jnp.allclose(loss3, ref3, atol=2e-3, rtol=2e-3), (loss3, ref3)

    # 4) tiny-input auto-dispatch path (plain JAX, no pallas launch cost).
    loss4 = get_loss_forward(pred, target)
    jax.block_until_ready(loss4)
    assert jnp.allclose(loss4, ref, atol=1e-5, rtol=1e-5), (loss4, ref)

    print("KERNEL_OK")
</pallas_src>

<mosaic_0001>
module attributes {stable_mosaic.version = 11 : i64} {
  func.func @_nll_partial_kernel(%arg0: i32, %arg1: memref<8x32xf32, #tpu.memory_space<vmem>>, %arg2: memref<8x1xi32, #tpu.memory_space<vmem>>, %arg3: memref<1x1xf32, #tpu.memory_space<smem>>) attributes {dimension_semantics = [#tpu.dimension_semantics<parallel>], iteration_bounds = array<i64: 1>, scalar_prefetch = 0 : i64, scratch_operands = 0 : i64, tpu.core_type = #tpu.core_type<tc>, window_params = [{transform_indices = @transform_0, window_bounds = array<i64: 8, 32>}, {transform_indices = @transform_1, window_bounds = array<i64: 8, 1>}, {transform_indices = @transform_2, window_bounds = array<i64: 1, 1>}]} {
    %c0 = arith.constant 0 : index
    %c0_0 = arith.constant 0 : index
    %0 = vector.load %arg1[%c0, %c0_0] : memref<8x32xf32, #tpu.memory_space<vmem>>, vector<8x32xf32>
    %c0_1 = arith.constant 0 : index
    %c0_2 = arith.constant 0 : index
    %1 = vector.load %arg2[%c0_1, %c0_2] : memref<8x1xi32, #tpu.memory_space<vmem>>, vector<8x1xi32>
    %2 = tpu.iota {dimensions = array<i32: 1>} : vector<8x32xi32>
    %3 = vector.broadcast %1 : vector<8x1xi32> to vector<8x32xi32>
    %4 = arith.cmpi eq, %2, %3 : vector<8x32xi32>
    %cst = arith.constant 0.000000e+00 : f32
    %5 = vector.broadcast %cst : f32 to vector<8x32xf32>
    %6 = arith.select %4, %0, %5 : vector<8x32xi1>, vector<8x32xf32>
    %cst_3 = arith.constant dense<0.000000e+00> : vector<8xf32>
    %7 = vector.multi_reduction <add>, %6, %cst_3 [1] : vector<8x32xf32> to vector<8xf32>
    %8 = vector.shape_cast %7 : vector<8xf32> to vector<8x1xf32>
    %9 = vector.shape_cast %8 : vector<8x1xf32> to vector<1x8x1xf32>
    %cst_4 = arith.constant dense<0.000000e+00> : vector<1xf32>
    %10 = vector.multi_reduction <add>, %9, %cst_4 [1, 2] : vector<1x8x1xf32> to vector<1xf32>
    %11 = vector.shape_cast %10 : vector<1xf32> to vector<1x1x1xf32>
    %12 = vector.extract %11[0, 0, 0] : f32 from vector<1x1x1xf32>
    %c0_5 = arith.constant 0 : index
    %c0_6 = arith.constant 0 : index
    %13 = memref.load %arg3[%c0_5, %c0_6] : memref<1x1xf32, #tpu.memory_space<smem>>
    memref.store %12, %arg3[%c0_5, %c0_6] : memref<1x1xf32, #tpu.memory_space<smem>>
    return
  }
  func.func @transform_0(%arg0: i32) -> (i32, i32) {
    %c0_i32 = arith.constant 0 : i32
    %c0_i32_0 = arith.constant 0 : i32
    return %arg0, %c0_i32 : i32, i32
  }
  func.func @transform_1(%arg0: i32) -> (i32, i32) {
    %c0_i32 = arith.constant 0 : i32
    %c0_i32_0 = arith.constant 0 : i32
    return %arg0, %c0_i32 : i32, i32
  }
  func.func @transform_2(%arg0: i32) -> (i32, i32) {
    %c0_i32 = arith.constant 0 : i32
    %c0_i32_0 = arith.constant 0 : i32
    return %arg0, %c0_i32 : i32, i32
  }
}

</mosaic_0001>

<bundles_post_ra>
// kernel: tpu_custom_call.1
= control target key start
LH: loop header
LB: loop body
LE: loop exit
PB: predicated region body
PF: predicated region fallthrough
CT: control target
= control target key end

     0   :  { %s103_s0 = inlined_call_operand.vmem [shape: f32[8,32], index: 0, kind: input, shape index: {}]   ;;  %s104_s1 = inlined_call_operand.vmem [shape: s32[8,1], index: 1, kind: input, shape index: {}]   ;;  %s105_s2 = inlined_call_operand.hbm [shape: f32[1,1], index: 2, kind: output, shape index: {}]  }
   0x1   :  { %v13_v0 = vld [vmem:[%s104_s1] sm:$0xff] }
   0x2   :  { %7 = vsyncpa [#allocation3], 0  ;;  %v68_v1 = vmov 0   ;;  %v14_v2 = vlaneseq  ;;  %v12_v4 = vld [vmem:[%s103_s0] sm:$0xff]  ;;  %vm21_vm0 = vcmask 261120   ;;  %vm25_vm2 = vcmask 7168  }
   0x3   :  { %55 = vset.pattern.permute.xlu0 %v68_v1  ;;  %s56_s14 = scalar_lea.hbm %s105_s2, 16 }
   0x4   :  { %17 = vperm.xlu0 %55, %v13_v0   ;;  %v15_v3 = vand.u32 127, %v14_v2  ;;  %p57_p0 = scmp.ne.s32.totalorder %s105_s2, %s56_s14  ;;  %p60_p1 = scmp.lt.u32.totalorder %s56_s14, %s105_s2 }
   0x6   :  { %p62_p2 = pnand %p60_p1, %p57_p0 }
  0x83   :  { %v18_v5 = vpop.permute.xlu0 %17 }
  0x84   :  { %vm19_vm1 = vcmp.eq.s32.totalorder %v15_v3, %v18_v5 }
  0x85   :  { %v20_v6 = vsel %vm19_vm1, %v12_v4, 0.0 }
  0x86   :  { %v22_v7 = vsel %vm21_vm0, %v20_v6, 0.0 }
  0x87   :  { %23 = vadd.xlane.f32.xlu0 %v22_v7 }
 0x114   :  { %v24_v8 = vpop.xlane.xlu0 %23 }
 0x115   :  { %v26_v9 = vsel %vm25_vm2, %v24_v8, 0.0 }
 0x116   :  { %27 = vadd.xlane.f32.xlu1 %v26_v9 }
 0x1a3   :  { %v28_v10 = vpop.xlane.xlu1 %27 }
 0x1a4   :  { %v29_v11 = vrot.slane %v28_v10, 4 }
 0x1a6   :  { %v30_v12 = vadd.f32 %v29_v11, %v28_v10 }
 0x1a8   :  { %v31_v13 = vrot.slane %v30_v12, 2 }
 0x1aa   :  { %v32_v14 = vadd.f32 %v31_v13, %v30_v12 }
 0x1ac   :  { %v33_v15 = vrot.slane %v32_v14, 1 }
 0x1ae   :  { %v34_v16 = vadd.f32 %v33_v15, %v32_v14 }
 0x1b0   :  { %51 = vpush %v34_v16 }
 0x1e1   :  { %s52_s1 = spop %51 }
 0x1e2   :  { %37 = sst [smem:[#allocation2]] %s52_s1 }
 0x1e3   :  { %65 = shalt.err (!%p62_p2)
}
 0x1e4   :  { %s69_s19 = smov [#allocation2]  }
 0x1e5   :  { %45 = dma.smem_to_hbm %s69_s19, 16, %s105_s2, [#allocation3]  }
 0x1e6   :  { %66 = dma.done.wait [#allocation3], 16  }
 0x1e7   :  { %67 = vsyncadd [#allocation3], 4294967280 }
 0x1e8   :  { %49 = sfence }
 0x1e9   :  { %50 = vsyncpa [#allocation3], 1 }

</bundles_post_ra>
